<compile_context>
chip_gen: v7x
topology: tpu7x:2x2x1
jax: 0.10.0
libtpu: 0.0.40
codegen_flags: <defaults>
</compile_context>

<pallas_src>
import functools

import jax
import jax.numpy as jnp
from jax.experimental import pallas as pl
from jax.experimental.pallas import tpu as pltpu


# ---------------------------------------------------------------------------
# Kernel: one (batch b, head h) grid step.
#   inputs  : q/k/v row-blocks for batch b, per-head projection weights,
#             per-head slice of the fc_o weight, fc_o bias.
#   outputs : attn[h*batch + b]  and the fc_o output block for batch b
#             (accumulated over the head axis).
# ---------------------------------------------------------------------------
def _mha_kernel(q_ref, k_ref, v_ref,
                wq_ref, bq_ref, wk_ref, bk_ref, wv_ref, bv_ref,
                wo_ref, bo_ref,
                attn_ref, out_ref,
                *, inv_scale_temp):
    h = pl.program_id(1)
    f32 = jnp.float32

    # --- head-h projections (native dtype into the MXU, f32 accumulation) ---
    # (q @ Wq_h + bq_h) * 1/(scale*temperature): constant folded into q once,
    # instead of scaling the (Nq, Nk) score matrix.
    qh = (jnp.dot(q_ref[...], wq_ref[...], preferred_element_type=f32)
          + bq_ref[...]) * inv_scale_temp                      # (n_q, d_k)
    kh = jnp.dot(k_ref[...], wk_ref[...], preferred_element_type=f32) \
        + bk_ref[...]                                          # (n_k, d_k)
    vh = jnp.dot(v_ref[...], wv_ref[...], preferred_element_type=f32) \
        + bv_ref[...]                                          # (n_v, d_v)

    # --- scores: q @ k^T (scale/temperature already folded into qh) ---
    s = jnp.einsum('qd,kd->qk', qh, kh, preferred_element_type=f32)  # (n_q, n_k)

    # --- numerically-stable softmax over keys (torch Softmax(dim=2)), f32 ---
    m = jnp.max(s, axis=-1, keepdims=True)
    e = jnp.exp(s - m)
    denom = jnp.sum(e, axis=-1, keepdims=True)
    attn = e * pl.reciprocal(denom, approx=True)               # EUP vrcp slot
    attn_ref[...] = attn.astype(attn_ref.dtype)

    # --- per-head context and its fc_o contribution, accumulated in-place ---
    oh = jnp.dot(attn, vh, preferred_element_type=f32)         # (n_q, d_v)
    po = jnp.dot(oh, wo_ref[...], preferred_element_type=f32)  # (n_q, d_o)

    @pl.when(h == 0)
    def _():
        out_ref[...] = (po + bo_ref[...]).astype(out_ref.dtype)

    @pl.when(h != 0)
    def _():
        out_ref[...] = out_ref[...] + po.astype(out_ref.dtype)


# ---------------------------------------------------------------------------
# One-time re-layout of PyTorch-style params to kernel-ready layout.
# Call this ONCE and reuse the result (avoids per-call transpose/reshape ops).
# ---------------------------------------------------------------------------
def prepare_mha_params(params):
    n_head, d_k, d_v = params["n_head"], params["d_k"], params["d_v"]
    d_o = params["wo"].shape[0]

    def per_head(w, b, d_head):
        # PyTorch Linear weight (H*d_head, d_in) -> per-head (H, d_in, d_head)
        w_h = w.reshape(n_head, d_head, -1).transpose(0, 2, 1)
        b_h = b.reshape(n_head, 1, d_head)
        return w_h, b_h

    wq_h, bq_h = per_head(params["wq"], params["bq"], d_k)
    wk_h, bk_h = per_head(params["wk"], params["bk"], d_k)
    wv_h, bv_h = per_head(params["wv"], params["bv"], d_v)
    # fc_o weight (d_o, H*d_v) -> per-head (H, d_v, d_o); out = sum_h o_h @ wo_h
    wo_h = params["wo"].T.reshape(n_head, d_v, d_o)
    bo = params["bo"].reshape(1, d_o)
    return dict(n_head=n_head, d_k=d_k, d_v=d_v, d_o=d_o,
                wq=wq_h, bq=bq_h, wk=wk_h, bk=bk_h, wv=wv_h, bv=bv_h,
                wo=wo_h, bo=bo)


# ---------------------------------------------------------------------------
# Wrapper: single pallas_call with grid=(batch, n_head).
# ---------------------------------------------------------------------------
def multi_head_attention(p, q, k, v):
    n_head, d_k, d_v, d_o = p["n_head"], p["d_k"], p["d_v"], p["d_o"]
    batch, n_q, d_q_ = q.shape
    _, n_k, d_k_ = k.shape
    _, n_v, d_v_ = v.shape

    # (q @ k^T / scale) / temperature == q@k^T * inv_scale_temp (trace-time const)
    inv_scale_temp = 1.0 / (float(d_k) ** 0.5 * 1e-14)

    kernel = functools.partial(_mha_kernel, inv_scale_temp=inv_scale_temp)

    # Blocks whose index is constant along a grid axis stay resident in VMEM
    # (q/k/v across h; weights across b; the output block across h).
    in_specs = [
        pl.BlockSpec((None, n_q, d_q_), lambda b, h: (b, 0, 0)),   # q  (batch b)
        pl.BlockSpec((None, n_k, d_k_), lambda b, h: (b, 0, 0)),   # k
        pl.BlockSpec((None, n_v, d_v_), lambda b, h: (b, 0, 0)),   # v
        pl.BlockSpec((None, d_q_, d_k), lambda b, h: (h, 0, 0)),   # wq (head h)
        pl.BlockSpec((None, 1, d_k),    lambda b, h: (h, 0, 0)),   # bq
        pl.BlockSpec((None, d_k_, d_k), lambda b, h: (h, 0, 0)),   # wk
        pl.BlockSpec((None, 1, d_k),    lambda b, h: (h, 0, 0)),   # bk
        pl.BlockSpec((None, d_v_, d_v), lambda b, h: (h, 0, 0)),   # wv
        pl.BlockSpec((None, 1, d_v),    lambda b, h: (h, 0, 0)),   # bv
        pl.BlockSpec((None, d_v, d_o),  lambda b, h: (h, 0, 0)),   # wo (head h)
        pl.BlockSpec((1, d_o),          lambda b, h: (0, 0)),      # bo
    ]
    out_specs = (
        # attn layout matches torch: index = h * batch + b
        pl.BlockSpec((None, n_q, n_k), lambda b, h: (h * batch + b, 0, 0)),
        # fc_o output: resident accumulator across the head (arbitrary) axis
        pl.BlockSpec((None, n_q, d_o), lambda b, h: (b, 0, 0)),
    )

    attn, out = pl.pallas_call(
        kernel,
        grid=(batch, n_head),
        in_specs=in_specs,
        out_specs=out_specs,
        out_shape=(
            jax.ShapeDtypeStruct((n_head * batch, n_q, n_k), jnp.float32),
            jax.ShapeDtypeStruct((batch, n_q, d_o), q.dtype),
        ),
        compiler_params=pltpu.CompilerParams(
            dimension_semantics=("parallel", "arbitrary"),
            vmem_limit_bytes=32 * 1024 * 1024,
        ),
    )(q, k, v,
      p["wq"], p["bq"], p["wk"], p["bk"], p["wv"], p["bv"], p["wo"], p["bo"])
    return attn, out


# ---------------------------------------------------------------------------
# Pure-JAX reference (mirrors the PyTorch module) for a correctness check.
# ---------------------------------------------------------------------------
def mha_reference(params, q, k, v):
    n_head, d_k, d_v = params["n_head"], params["d_k"], params["d_v"]
    batch, n_q, _ = q.shape
    _, n_k, _ = k.shape
    _, n_v, _ = v.shape
    qp = q @ params["wq"].T + params["bq"]
    kp = k @ params["wk"].T + params["bk"]
    vp = v @ params["wv"].T + params["bv"]
    qh = qp.reshape(batch, n_q, n_head, d_k).transpose(2, 0, 1, 3).reshape(-1, n_q, d_k)
    kh = kp.reshape(batch, n_k, n_head, d_k).transpose(2, 0, 1, 3).reshape(-1, n_k, d_k)
    vh = vp.reshape(batch, n_v, n_head, d_v).transpose(2, 0, 1, 3).reshape(-1, n_v, d_v)
    scale = float(d_k) ** 0.5
    u = jnp.einsum('bqd,bkd->bqk', qh, kh) / scale
    attn = jax.nn.softmax(u / 1e-14, axis=-1)
    out = jnp.einsum('bqk,bkd->bqd', attn, vh)
    out = out.reshape(n_head, batch, n_q, d_v).transpose(1, 2, 0, 3).reshape(batch, n_q, -1)
    out = out @ params["wo"].T + params["bo"]
    return attn, out


def init_params(key, n_head, d_k_, d_v_, d_k, d_v, d_o):
    ks = jax.random.split(key, 8)

    def lin(kw, kb, d_out, d_in):
        bound = 1.0 / (d_in ** 0.5)
        w = jax.random.uniform(kw, (d_out, d_in), jnp.float32, -bound, bound)
        b = jax.random.uniform(kb, (d_out,), jnp.float32, -bound, bound)
        return w, b

    wq, bq = lin(ks[0], ks[1], n_head * d_k, d_k_)
    wk, bk = lin(ks[2], ks[3], n_head * d_k, d_k_)
    wv, bv = lin(ks[4], ks[5], n_head * d_v, d_v_)
    wo, bo = lin(ks[6], ks[7], d_o, n_head * d_v)
    return dict(n_head=n_head, d_k=d_k, d_v=d_v,
                wq=wq, bq=bq, wk=wk, bk=bk, wv=wv, bv=bv, wo=wo, bo=bo)


if __name__ == "__main__":
    # Small shapes consistent with the module's forward.
    n_head, d_k_, d_v_, d_k, d_v, d_o = 2, 32, 32, 16, 16, 32
    batch, n_q, n_k, n_v = 2, 8, 8, 8

    key = jax.random.PRNGKey(0)
    kp_, kq, kk, kv = jax.random.split(key, 4)
    params = init_params(kp_, n_head, d_k_, d_v_, d_k, d_v, d_o)
    kernel_params = prepare_mha_params(params)   # one-time weight re-layout

    q = jax.random.normal(kq, (batch, n_q, d_k_), jnp.float32)
    k = jax.random.normal(kk, (batch, n_k, d_k_), jnp.float32)
    v = jax.random.normal(kv, (batch, n_v, d_v_), jnp.float32)

    attn, out = multi_head_attention(kernel_params, q, k, v)
    jax.block_until_ready((attn, out))

    assert attn.shape == (n_head * batch, n_q, n_k)
    assert out.shape == (batch, n_q, d_o)

    attn_r, out_r = mha_reference(params, q, k, v)
    assert bool(jnp.all(jnp.isfinite(attn))) and bool(jnp.all(jnp.isfinite(out)))
    # Slightly relaxed tolerance: approx EUP reciprocal + different (but
    # mathematically equivalent) reduction splitting of fc_q / fc_o.
    assert jnp.allclose(attn, attn_r, rtol=2e-3, atol=2e-3)
    assert jnp.allclose(out, out_r, rtol=2e-3, atol=2e-3)

    print("KERNEL_OK")
</pallas_src>

<mosaic_0001>
module attributes {stable_mosaic.version = 11 : i64} {
  func.func @_mha_kernel(%arg0: i32, %arg1: i32, %arg2: memref<1x8x32xf32, #tpu.memory_space<vmem>>, %arg3: memref<1x8x32xf32, #tpu.memory_space<vmem>>, %arg4: memref<1x8x32xf32, #tpu.memory_space<vmem>>, %arg5: memref<1x32x16xf32, #tpu.memory_space<vmem>>, %arg6: memref<1x1x16xf32, #tpu.memory_space<vmem>>, %arg7: memref<1x32x16xf32, #tpu.memory_space<vmem>>, %arg8: memref<1x1x16xf32, #tpu.memory_space<vmem>>, %arg9: memref<1x32x16xf32, #tpu.memory_space<vmem>>, %arg10: memref<1x1x16xf32, #tpu.memory_space<vmem>>, %arg11: memref<1x16x32xf32, #tpu.memory_space<vmem>>, %arg12: memref<1x32xf32, #tpu.memory_space<vmem>>, %arg13: memref<1x8x8xf32, #tpu.memory_space<vmem>>, %arg14: memref<1x8x32xf32, #tpu.memory_space<vmem>>) attributes {dimension_semantics = [#tpu.dimension_semantics<parallel>, #tpu.dimension_semantics<arbitrary>], iteration_bounds = array<i64: 2, 2>, scalar_prefetch = 0 : i64, scratch_operands = 0 : i64, tpu.core_type = #tpu.core_type<tc>, window_params = [{transform_indices = @transform_0, window_bounds = array<i64: 1, 8, 32>}, {transform_indices = @transform_1, window_bounds = array<i64: 1, 8, 32>}, {transform_indices = @transform_2, window_bounds = array<i64: 1, 8, 32>}, {transform_indices = @transform_3, window_bounds = array<i64: 1, 32, 16>}, {transform_indices = @transform_4, window_bounds = array<i64: 1, 1, 16>}, {transform_indices = @transform_5, window_bounds = array<i64: 1, 32, 16>}, {transform_indices = @transform_6, window_bounds = array<i64: 1, 1, 16>}, {transform_indices = @transform_7, window_bounds = array<i64: 1, 32, 16>}, {transform_indices = @transform_8, window_bounds = array<i64: 1, 1, 16>}, {transform_indices = @transform_9, window_bounds = array<i64: 1, 16, 32>}, {pipeline_mode = #tpu.pipeline_mode<synchronous>, transform_indices = @transform_10, window_bounds = array<i64: 1, 32>}, {transform_indices = @transform_11, window_bounds = array<i64: 1, 8, 8>}, {transform_indices = @transform_12, window_bounds = array<i64: 1, 8, 32>}]} {
    %c0 = arith.constant 0 : index
    %c0_0 = arith.constant 0 : index
    %c0_1 = arith.constant 0 : index
    %0 = vector.load %arg2[%c0, %c0_0, %c0_1] : memref<1x8x32xf32, #tpu.memory_space<vmem>>, vector<1x8x32xf32>
    %1 = vector.shape_cast %0 : vector<1x8x32xf32> to vector<8x32xf32>
    %c0_2 = arith.constant 0 : index
    %c0_3 = arith.constant 0 : index
    %c0_4 = arith.constant 0 : index
    %2 = vector.load %arg5[%c0_2, %c0_3, %c0_4] : memref<1x32x16xf32, #tpu.memory_space<vmem>>, vector<1x32x16xf32>
    %3 = vector.shape_cast %2 : vector<1x32x16xf32> to vector<32x16xf32>
    %cst = arith.constant dense<0.000000e+00> : vector<8x16xf32>
    %4 = tpu.matmul %1, %3, %cst {dimension_numbers = #tpu.dot_dimension_numbers<[1], [0], [0], [1], [0, 0, 1, 1], [], []>} : vector<8x32xf32>, vector<32x16xf32>, vector<8x16xf32> -> vector<8x16xf32>
    %c0_5 = arith.constant 0 : index
    %c0_6 = arith.constant 0 : index
    %c0_7 = arith.constant 0 : index
    %5 = vector.load %arg6[%c0_5, %c0_6, %c0_7] : memref<1x1x16xf32, #tpu.memory_space<vmem>>, vector<1x1x16xf32>
    %6 = vector.shape_cast %5 : vector<1x1x16xf32> to vector<1x16xf32>
    %7 = vector.broadcast %6 : vector<1x16xf32> to vector<8x16xf32>
    %8 = arith.addf %4, %7 : vector<8x16xf32>
    %cst_8 = arith.constant 2.500000e+13 : f32
    %9 = vector.broadcast %cst_8 : f32 to vector<8x16xf32>
    %10 = arith.mulf %8, %9 : vector<8x16xf32>
    %c0_9 = arith.constant 0 : index
    %c0_10 = arith.constant 0 : index
    %c0_11 = arith.constant 0 : index
    %11 = vector.load %arg3[%c0_9, %c0_10, %c0_11] : memref<1x8x32xf32, #tpu.memory_space<vmem>>, vector<1x8x32xf32>
    %12 = vector.shape_cast %11 : vector<1x8x32xf32> to vector<8x32xf32>
    %c0_12 = arith.constant 0 : index
    %c0_13 = arith.constant 0 : index
    %c0_14 = arith.constant 0 : index
    %13 = vector.load %arg7[%c0_12, %c0_13, %c0_14] : memref<1x32x16xf32, #tpu.memory_space<vmem>>, vector<1x32x16xf32>
    %14 = vector.shape_cast %13 : vector<1x32x16xf32> to vector<32x16xf32>
    %cst_15 = arith.constant dense<0.000000e+00> : vector<8x16xf32>
    %15 = tpu.matmul %12, %14, %cst_15 {dimension_numbers = #tpu.dot_dimension_numbers<[1], [0], [0], [1], [0, 0, 1, 1], [], []>} : vector<8x32xf32>, vector<32x16xf32>, vector<8x16xf32> -> vector<8x16xf32>
    %c0_16 = arith.constant 0 : index
    %c0_17 = arith.constant 0 : index
    %c0_18 = arith.constant 0 : index
    %16 = vector.load %arg8[%c0_16, %c0_17, %c0_18] : memref<1x1x16xf32, #tpu.memory_space<vmem>>, vector<1x1x16xf32>
    %17 = vector.shape_cast %16 : vector<1x1x16xf32> to vector<1x16xf32>
    %18 = vector.broadcast %17 : vector<1x16xf32> to vector<8x16xf32>
    %19 = arith.addf %15, %18 : vector<8x16xf32>
    %c0_19 = arith.constant 0 : index
    %c0_20 = arith.constant 0 : index
    %c0_21 = arith.constant 0 : index
    %20 = vector.load %arg4[%c0_19, %c0_20, %c0_21] : memref<1x8x32xf32, #tpu.memory_space<vmem>>, vector<1x8x32xf32>
    %21 = vector.shape_cast %20 : vector<1x8x32xf32> to vector<8x32xf32>
    %c0_22 = arith.constant 0 : index
    %c0_23 = arith.constant 0 : index
    %c0_24 = arith.constant 0 : index
    %22 = vector.load %arg9[%c0_22, %c0_23, %c0_24] : memref<1x32x16xf32, #tpu.memory_space<vmem>>, vector<1x32x16xf32>
    %23 = vector.shape_cast %22 : vector<1x32x16xf32> to vector<32x16xf32>
    %cst_25 = arith.constant dense<0.000000e+00> : vector<8x16xf32>
    %24 = tpu.matmul %21, %23, %cst_25 {dimension_numbers = #tpu.dot_dimension_numbers<[1], [0], [0], [1], [0, 0, 1, 1], [], []>} : vector<8x32xf32>, vector<32x16xf32>, vector<8x16xf32> -> vector<8x16xf32>
    %c0_26 = arith.constant 0 : index
    %c0_27 = arith.constant 0 : index
    %c0_28 = arith.constant 0 : index
    %25 = vector.load %arg10[%c0_26, %c0_27, %c0_28] : memref<1x1x16xf32, #tpu.memory_space<vmem>>, vector<1x1x16xf32>
    %26 = vector.shape_cast %25 : vector<1x1x16xf32> to vector<1x16xf32>
    %27 = vector.broadcast %26 : vector<1x16xf32> to vector<8x16xf32>
    %28 = arith.addf %24, %27 : vector<8x16xf32>
    "tpu.trace_start"() <{level = 10 : i32, message = "qd,kd->qk"}> : () -> ()
    %cst_29 = arith.constant dense<0.000000e+00> : vector<8x8xf32>
    %29 = tpu.matmul %10, %19, %cst_29 {dimension_numbers = #tpu.dot_dimension_numbers<[1], [1], [0], [0], [0, 0, 1, 0], [], []>} : vector<8x16xf32>, vector<8x16xf32>, vector<8x8xf32> -> vector<8x8xf32>
    "tpu.trace_stop"() : () -> ()
    %cst_30 = arith.constant dense<0xFF800000> : vector<8xf32>
    %30 = vector.multi_reduction <maximumf>, %29, %cst_30 [1] : vector<8x8xf32> to vector<8xf32>
    %31 = vector.shape_cast %30 : vector<8xf32> to vector<8x1xf32>
    %32 = vector.broadcast %31 : vector<8x1xf32> to vector<8x8xf32>
    %33 = arith.subf %29, %32 : vector<8x8xf32>
    %34 = math.exp %33 : vector<8x8xf32>
    %cst_31 = arith.constant dense<0.000000e+00> : vector<8xf32>
    %35 = vector.multi_reduction <add>, %34, %cst_31 [1] : vector<8x8xf32> to vector<8xf32>
    %36 = vector.shape_cast %35 : vector<8xf32> to vector<8x1xf32>
    %37 = tpu.reciprocal %36 {approx = true} : vector<8x1xf32> -> vector<8x1xf32>
    %38 = vector.broadcast %37 : vector<8x1xf32> to vector<8x8xf32>
    %39 = arith.mulf %34, %38 : vector<8x8xf32>
    %c0_32 = arith.constant 0 : index
    %c0_33 = arith.constant 0 : index
    %c0_34 = arith.constant 0 : index
    %40 = vector.load %arg13[%c0_32, %c0_33, %c0_34] : memref<1x8x8xf32, #tpu.memory_space<vmem>>, vector<1x8x8xf32>
    %41 = vector.shape_cast %40 : vector<1x8x8xf32> to vector<8x8xf32>
    %42 = vector.shape_cast %39 : vector<8x8xf32> to vector<1x8x8xf32>
    tpu.vector_store %arg13[%c0_32, %c0_33, %c0_34], %42 {strides = array<i32>} : memref<1x8x8xf32, #tpu.memory_space<vmem>>, vector<1x8x8xf32>,
    %cst_35 = arith.constant dense<0.000000e+00> : vector<8x16xf32>
    %43 = tpu.matmul %39, %28, %cst_35 {dimension_numbers = #tpu.dot_dimension_numbers<[1], [0], [0], [1], [0, 0, 1, 1], [], []>} : vector<8x8xf32>, vector<8x16xf32>, vector<8x16xf32> -> vector<8x16xf32>
    %c0_36 = arith.constant 0 : index
    %c0_37 = arith.constant 0 : index
    %c0_38 = arith.constant 0 : index
    %44 = vector.load %arg11[%c0_36, %c0_37, %c0_38] : memref<1x16x32xf32, #tpu.memory_space<vmem>>, vector<1x16x32xf32>
    %45 = vector.shape_cast %44 : vector<1x16x32xf32> to vector<16x32xf32>
    %cst_39 = arith.constant dense<0.000000e+00> : vector<8x32xf32>
    %46 = tpu.matmul %43, %45, %cst_39 {dimension_numbers = #tpu.dot_dimension_numbers<[1], [0], [0], [1], [0, 0, 1, 1], [], []>} : vector<8x16xf32>, vector<16x32xf32>, vector<8x32xf32> -> vector<8x32xf32>
    %c0_i32 = arith.constant 0 : i32
    %47 = arith.cmpi eq, %arg1, %c0_i32 : i32
    %48 = arith.extui %47 : i1 to i32
    %c0_i32_40 = arith.constant 0 : i32
    %49 = arith.cmpi ne, %48, %c0_i32_40 : i32
    scf.if %49 {
      %c0_43 = arith.constant 0 : index
      %c0_44 = arith.constant 0 : index
      %53 = vector.load %arg12[%c0_43, %c0_44] : memref<1x32xf32, #tpu.memory_space<vmem>>, vector<1x32xf32>
      %54 = vector.broadcast %53 : vector<1x32xf32> to vector<8x32xf32>
      %55 = arith.addf %46, %54 : vector<8x32xf32>
      %c0_45 = arith.constant 0 : index
      %c0_46 = arith.constant 0 : index
      %c0_47 = arith.constant 0 : index
      %56 = vector.load %arg14[%c0_45, %c0_46, %c0_47] : memref<1x8x32xf32, #tpu.memory_space<vmem>>, vector<1x8x32xf32>
      %57 = vector.shape_cast %56 : vector<1x8x32xf32> to vector<8x32xf32>
      %58 = vector.shape_cast %55 : vector<8x32xf32> to vector<1x8x32xf32>
      tpu.vector_store %arg14[%c0_45, %c0_46, %c0_47], %58 {strides = array<i32>} : memref<1x8x32xf32, #tpu.memory_space<vmem>>, vector<1x8x32xf32>,
    } else {
    }
    %c0_i32_41 = arith.constant 0 : i32
    %50 = arith.cmpi ne, %arg1, %c0_i32_41 : i32
    %51 = arith.extui %50 : i1 to i32
    %c0_i32_42 = arith.constant 0 : i32
    %52 = arith.cmpi ne, %51, %c0_i32_42 : i32
    scf.if %52 {
      %c0_43 = arith.constant 0 : index
      %c0_44 = arith.constant 0 : index
      %c0_45 = arith.constant 0 : index
      %53 = vector.load %arg14[%c0_43, %c0_44, %c0_45] : memref<1x8x32xf32, #tpu.memory_space<vmem>>, vector<1x8x32xf32>
      %54 = vector.shape_cast %53 : vector<1x8x32xf32> to vector<8x32xf32>
      %55 = arith.addf %54, %46 : vector<8x32xf32>
      %c0_46 = arith.constant 0 : index
      %c0_47 = arith.constant 0 : index
      %c0_48 = arith.constant 0 : index
      %56 = vector.load %arg14[%c0_46, %c0_47, %c0_48] : memref<1x8x32xf32, #tpu.memory_space<vmem>>, vector<1x8x32xf32>
      %57 = vector.shape_cast %56 : vector<1x8x32xf32> to vector<8x32xf32>
      %58 = vector.shape_cast %55 : vector<8x32xf32> to vector<1x8x32xf32>
      tpu.vector_store %arg14[%c0_46, %c0_47, %c0_48], %58 {strides = array<i32>} : memref<1x8x32xf32, #tpu.memory_space<vmem>>, vector<1x8x32xf32>,
    } else {
    }
    return
  }
  func.func @transform_0(%arg0: i32, %arg1: i32) -> (i32, i32, i32) {
    %c0_i32 = arith.constant 0 : i32
    %c0_i32_0 = arith.constant 0 : i32
    %c0_i32_1 = arith.constant 0 : i32
    return %arg0, %c0_i32, %c0_i32_0 : i32, i32, i32
  }
  func.func @transform_1(%arg0: i32, %arg1: i32) -> (i32, i32, i32) {
    %c0_i32 = arith.constant 0 : i32
    %c0_i32_0 = arith.constant 0 : i32
    %c0_i32_1 = arith.constant 0 : i32
    return %arg0, %c0_i32, %c0_i32_0 : i32, i32, i32
  }
  func.func @transform_2(%arg0: i32, %arg1: i32) -> (i32, i32, i32) {
    %c0_i32 = arith.constant 0 : i32
    %c0_i32_0 = arith.constant 0 : i32
    %c0_i32_1 = arith.constant 0 : i32
    return %arg0, %c0_i32, %c0_i32_0 : i32, i32, i32
  }
  func.func @transform_3(%arg0: i32, %arg1: i32) -> (i32, i32, i32) {
    %c0_i32 = arith.constant 0 : i32
    %c0_i32_0 = arith.constant 0 : i32
    %c0_i32_1 = arith.constant 0 : i32
    return %arg1, %c0_i32, %c0_i32_0 : i32, i32, i32
  }
  func.func @transform_4(%arg0: i32, %arg1: i32) -> (i32, i32, i32) {
    %c0_i32 = arith.constant 0 : i32
    %c0_i32_0 = arith.constant 0 : i32
    %c0_i32_1 = arith.constant 0 : i32
    return %arg1, %c0_i32, %c0_i32_0 : i32, i32, i32
  }
  func.func @transform_5(%arg0: i32, %arg1: i32) -> (i32, i32, i32) {
    %c0_i32 = arith.constant 0 : i32
    %c0_i32_0 = arith.constant 0 : i32
    %c0_i32_1 = arith.constant 0 : i32
    return %arg1, %c0_i32, %c0_i32_0 : i32, i32, i32
  }
  func.func @transform_6(%arg0: i32, %arg1: i32) -> (i32, i32, i32) {
    %c0_i32 = arith.constant 0 : i32
    %c0_i32_0 = arith.constant 0 : i32
    %c0_i32_1 = arith.constant 0 : i32
    return %arg1, %c0_i32, %c0_i32_0 : i32, i32, i32
  }
  func.func @transform_7(%arg0: i32, %arg1: i32) -> (i32, i32, i32) {
    %c0_i32 = arith.constant 0 : i32
    %c0_i32_0 = arith.constant 0 : i32
    %c0_i32_1 = arith.constant 0 : i32
    return %arg1, %c0_i32, %c0_i32_0 : i32, i32, i32
  }
  func.func @transform_8(%arg0: i32, %arg1: i32) -> (i32, i32, i32) {
    %c0_i32 = arith.constant 0 : i32
    %c0_i32_0 = arith.constant 0 : i32
    %c0_i32_1 = arith.constant 0 : i32
    return %arg1, %c0_i32, %c0_i32_0 : i32, i32, i32
  }
  func.func @transform_9(%arg0: i32, %arg1: i32) -> (i32, i32, i32) {
    %c0_i32 = arith.constant 0 : i32
    %c0_i32_0 = arith.constant 0 : i32
    %c0_i32_1 = arith.constant 0 : i32
    return %arg1, %c0_i32, %c0_i32_0 : i32, i32, i32
  }
  func.func @transform_10(%arg0: i32, %arg1: i32) -> (i32, i32) {
    %c0_i32 = arith.constant 0 : i32
    %c0_i32_0 = arith.constant 0 : i32
    %c0_i32_1 = arith.constant 0 : i32
    return %c0_i32, %c0_i32_0 : i32, i32
  }
  func.func @transform_11(%arg0: i32, %arg1: i32) -> (i32, i32, i32) {
    %c2_i32 = arith.constant 2 : i32
    %0 = arith.muli %arg1, %c2_i32 : i32
    %1 = arith.addi %0, %arg0 : i32
    %c0_i32 = arith.constant 0 : i32
    %c0_i32_0 = arith.constant 0 : i32
    %c0_i32_1 = arith.constant 0 : i32
    return %1, %c0_i32, %c0_i32_0 : i32, i32, i32
  }
  func.func @transform_12(%arg0: i32, %arg1: i32) -> (i32, i32, i32) {
    %c0_i32 = arith.constant 0 : i32
    %c0_i32_0 = arith.constant 0 : i32
    %c0_i32_1 = arith.constant 0 : i32
    return %arg0, %c0_i32, %c0_i32_0 : i32, i32, i32
  }
}

</mosaic_0001>

<bundles_post_ra>
// kernel: tpu_custom_call.1
= control target key start
LH: loop header
LB: loop body
LE: loop exit
PB: predicated region body
PF: predicated region fallthrough
CT: control target
= control target key end

     0   :  { %s2126_s0 = inlined_call_operand.vmem [shape: f32[2,8,32], index: 0, kind: input, shape index: {}]   ;;  %s2127_s1 = inlined_call_operand.vmem [shape: f32[2,8,32], index: 1, kind: input, shape index: {}]   ;;  %s2128_s2 = inlined_call_operand.vmem [shape: f32[2,8,32], index: 2, kind: input, shape index: {}]   ;;  %s2129_s3 = inlined_call_operand.vmem [shape: f32[2,32,16], index: 3, kind: input, shape index: {}]   ;;  %s2130_s4 = inlined_call_operand.vmem [shape: f32[2,1,16], index: 4, kind: input, shape index: {}]   ;;  %s2131_s5 = inlined_call_operand.vmem [shape: f32[2,32,16], index: 5, kind: input, shape index: {}]   ;;  %s2132_s6 = inlined_call_operand.vmem [shape: f32[2,1,16], index: 6, kind: input, shape index: {}]   ;;  %s2133_s7 = inlined_call_operand.vmem [shape: f32[2,32,16], index: 7, kind: input, shape index: {}]   ;;  %s2134_s8 = inlined_call_operand.vmem [shape: f32[2,1,16], index: 8, kind: input, shape index: {}]   ;;  %s2135_s9 = inlined_call_operand.vmem [shape: f32[2,16,32], index: 9, kind: input, shape index: {}]   ;;  %s2136_s10 = inlined_call_operand.vmem [shape: f32[1,32], index: 10, kind: input, shape index: {}]   ;;  %s2137_s11 = inlined_call_operand.hbm [shape: f32[4,8,8], index: 11, kind: output, shape index: {0}]   ;;  %s2138_s12 = inlined_call_operand.hbm [shape: f32[2,8,32], index: 12, kind: output, shape index: {1}]  }
   0x1   :  { %2150 = sst [smem:[#allocation15_spill]] %s2126_s0 }
   0x2   :  { %2151 = sst [smem:[#allocation16_spill]] %s2127_s1 }
   0x3   :  { %2152 = sst [smem:[#allocation17_spill]] %s2128_s2 }
   0x4   :  { %2153 = sst [smem:[#allocation18_spill]] %s2129_s3 }
   0x5   :  { %2154 = sst [smem:[#allocation19_spill]] %s2130_s4 }
   0x6   :  { %2155 = sst [smem:[#allocation20_spill]] %s2134_s8 }
   0x7   :  { %2156 = sst [smem:[#allocation21_spill]] %s2135_s9 }
   0x8   :  { %2157 = sst [smem:[#allocation22_spill]] %s2136_s10 }
   0x9   :  { %2158 = sst [smem:[#allocation23_spill]] %s2137_s11 }
   0xa   :  { %2159 = sst [smem:[#allocation24_spill]] %s2138_s12 }
   0xb   :  { %18 = vsyncpa [#allocation3], 0 }
   0xc   :  { %20 = vsyncpa [#allocation3 + $0x1], 0 }
   0xd   :  { %21 = vsyncpa [#allocation5], 0 }
   0xe   :  { %23 = vsyncpa [#allocation5 + $0x1], 0  ;;  %s1812_s21 = smov 0   ;;  %s1814_s22 = smov 0  }
   0xf   :  { %s1816_s23 = smov 0   ;;  %s1818_s24 = smov 0  }
  0x10   :  { %s1820_s25 = smov 0   ;;  %s1822_s26 = smov 0  }
  0x11   :  { %s1824_s27 = smov 0   ;;  %s1826_s28 = smov 0  }
  0x12   :  { %s1828_s29 = smov 0   ;;  %s1830_s30 = smov 0  }
  0x13   :  { %s1832_s13 = smov 0  }
  0x14 LB: > { %2160 = sst [smem:[#allocation8_spill]] %s1712_s24  ;;  %s1346_s14 = sadd.s32 4294967295, %s1740_s13   ;;  %s1740_s13 = sphi %s1832_s13, %s29_s13   ;;  %s1736_s30 = sphi %s1830_s30, %s2193_s30   ;;  %s1732_s29 = sphi %s1828_s29, %s2192_s29   ;;  %s1728_s28 = sphi %s1826_s28, %s2191_s28   ;;  %s1724_s27 = sphi %s1824_s27, %s2190_s27   ;;  %s1720_s26 = sphi %s1822_s26, %s2199_s26   ;;  %s1716_s25 = sphi %s1820_s25, %s2198_s25   ;;  %s1712_s24 = sphi %s1818_s24, %s2197_s24   ;;  %s1708_s23 = sphi %s1816_s23, %s2196_s23   ;;  %s1704_s22 = sphi %s1814_s22, %s2195_s22   ;;  %s1700_s21 = sphi %s1812_s21, %s2194_s21  }
  0x15   : > { %2161 = sst [smem:[#allocation9_spill]] %s1732_s29  ;;  %s1347_s15 = sadd.s32 4294967294, %s1740_s13  }
  0x16   : > { %2162 = sst [smem:[#allocation10_spill]] %s1736_s30  ;;  %s38_s16 = sadd.s32 1, %s1732_s29 }
  0x17   : > { %s41_s17 = sadd.s32 1, %s1736_s30  ;;  %p39_p0 = scmp.ge.s32.totalorder %s38_s16, 2 }
  0x18   : > { %s1348_s18 = sshll.u32 %s1732_s29, 1  ;;  %s333_s20 = sadd.s32 1, %s1720_s26 }
  0x19   : > { %s327_s19 = sadd.s32 %s1736_s30, %s1348_s18  ;;  %s2201_s16 = smov (%p39_p0, %s38_s16), 0 }
  0x1a   : > { %2163 = sst [smem:[#allocation11_spill]] %s2201_s16  ;;  %s2203_s17 = smov (!%p39_p0, %s41_s17), %s1736_s30 }
  0x1b   : > { %s1349_s12 = sshll.u32 %s2201_s16, 1  ;;  %p343_p1 = scmp.ne.s32.totalorder %s1720_s26, %s1716_s25 }
  0x1c   : > { %p43_p2 = scmp.ge.s32.totalorder %s2203_s17, 2  ;;  %p1880_p3 = scmp.eq.s32.totalorder %s1346_s14, 3 }
  0x1d   : > { %p349_p4 = scmp.ne.s32.totalorder %s1716_s25, %s1712_s24  ;;  %p1886_p5 = scmp.eq.s32.totalorder %s1347_s15, 3 }
  0x1e   : > { %s2205_s17 = smov (%p43_p2, %s2203_s17), 0  ;;  %p1894_p6 = por %p1880_p3, %p343_p1 }
  0x1f   : > { %2166 = sst [smem:[#allocation12_spill]] %s2205_s17  ;;  %p1900_p7 = por %p1886_p5, %p349_p4 }
  0x20   : > { %s2167_s14 = scalar_select %p1894_p6, 1, 0 }
  0x21   : > { %s2169_s16 = scalar_select %p1900_p7, 1, 0 }
  0x22   : > { %2168 = sst [smem:[#allocation13_spill]] %s2167_s14  ;;  %s329_s15 = sadd.s32 %s1349_s12, %s2205_s17 }
  0x23   : > { %s356_s29 = ssub.s32 %s1736_s30, %s2205_s17  ;;  %s330_s24 = ssub.s32 %s327_s19, %s329_s15 }
  0x24   : > { %p357_p8 = scmp.eq.s32.totalorder %s356_s29, 0  ;;  %p331_p9 = scmp.eq.s32.totalorder %s330_s24, 0 }
  0x25   : > { %s359_s10 = sadd.s32 1, %s1708_s23  ;;  %p369_p10 = scmp.ne.s32.totalorder %s1708_s23, %s1704_s22 }
  0x26   : > { %s1909_s9 = scalar_select %p357_p8, %s1708_s23, %s359_s10  }
  0x27   : > { %s1912_s8 = scalar_select %p331_p9, %s1720_s26, %s333_s20  }
  0x28   : > { %p375_p11 = scmp.ne.s32.totalorder %s1704_s22, %s1700_s21  ;;  %p1352_p12 = scmp.ge.s32.totalorder %s1740_s13, 1 }
  0x29   : > { %2170 = sst [smem:[#allocation14_spill]] %s1912_s8  ;;  %p468_p13 = scmp.lt.s32.totalorder %s1740_s13, 5 }
  0x2a   : > { %p1922_p0 = por %p369_p10, %p1880_p3  ;;  %p1928_p1 = por %p375_p11, %p1886_p5 }
  0x2b   : > { %p469_p2 = pnand %p1352_p12, %p468_p13 }
  0x2c   : > { %s2172_s12 = scalar_select %p1928_p1, 1, 0 }
  0x2d   : > { %472 = sbr.rel (%p469_p2) target bundleno = 1298 (0x512), region = 64  ;;  %s2146_s10 = sand.u32 (!%p469_p2), 1, %s1704_s22   ;;  %v1742_v0 = vmov (!%p469_p2), 0.0|0.0   ;;  %vm1743_vm0 = vmmov (!%p469_p2), 0   ;;  %v1744_v1 = vmov (!%p469_p2), 0.0   ;;  %vm606_vm1 = vcmask (!%p469_p2), 261120  }
  0x2e   : > { %p563_p4 = scmp.lt.s32.totalorder (!%p469_p2), %s1724_s27, 1  ;;  %1468 = vmatprep.subr.bf16.mxu1 (!%p469_p2), %v1742_v0  ;;  %s1937_s11 = sshll.u32 (!%p469_p2), %s2146_s10, 3  ;;  %1462 = vmatprep.subr.bf16.mxu0 (!%p469_p2), %v1742_v0  ;;  %vm851_vm2 = vcmask (!%p469_p2), 130048   ;;  %vm928_vm3 = vcmask (!%p469_p2), 64512  }
  0x2f   : > { %p551_p3 = scmp.lt.s32.totalorder (!%p469_p2), %s1728_s28, 1  ;;  %1431 = vmatprep.mubr.msk.f32.mxu1 (!%p469_p2), %vm1743_vm0, %v1744_v1  ;;  %1420 = vmatprep.mubr.msk.f32.mxu0 (!%p469_p2), %vm1743_vm0, %v1744_v1  ;;  %s2173_s3 = sld [smem:[#allocation18_spill]] (!%p469_p2) }
  0x30   : > { %s2174_s1 = sld [smem:[#allocation16_spill]] (!%p469_p2)  ;;  %s2175_s0 = sld [smem:[#allocation15_spill]] (!%p469_p2) }
  0x31   : > { %s2176_s4 = sld [smem:[#allocation19_spill]] (!%p469_p2)  ;;  %s2177_s2 = sld [smem:[#allocation17_spill]] (!%p469_p2) }
  0x32   : > { %p1376_p5 = scmp.ne.s32.totalorder (!%p469_p2), %s1724_s27, 0 }
  0x34   : > { %s1946_s24 = scalar_select %p563_p4, %s1724_s27, 1 }
  0x35   : > { %s552_s29 = scalar_select %p551_p3, %s1728_s28, 1 }
  0x36   : > { %s1950_s19 = sshll.u32 %s1946_s24, 5  ;;  %s578_s10 = scalar_lea.vmem %s2132_s6, %s1946_s24 }
  0x37   : > { %s575_s15 = scalar_lea.vmem %s2131_s5, %s1950_s19  ;;  %s567_s30 = scalar_lea.vmem %s2173_s3, %s1950_s19  ;;  %v1368_v16 = vld [vmem:[%s578_s10] ss:$0 sm:$0xff] }
  0x38   : > { %v682_v2 = vld [vmem:[%s575_s15] sm:$0xff]  ;;  %v683_v3 = vld [vmem:[%s575_s15 + $0x8] sm:$0xff]  ;;  %v684_v4 = vld [vmem:[%s575_s15 + $0x10] sm:$0xff]  ;;  %s1960_s8 = sshll.u32 %s552_s29, 3  ;;  %s570_s18 = scalar_lea.vmem %s2176_s4, %s1946_s24 }
  0x39   : > { %v1469_v5 = vpack.c.bf16 %v683_v3, %v682_v2  ;;  %v595_v6 = vld [vmem:[%s567_s30] sm:$0xff]  ;;  %v596_v7 = vld [vmem:[%s567_s30 + $0x8] sm:$0xff]  ;;  %v685_v8 = vld [vmem:[%s575_s15 + $0x18] sm:$0xff]  ;;  %s558_s20 = scalar_lea.vmem %s2174_s1, %s1960_s8  ;;  %s554_s15 = scalar_lea.vmem %s2175_s0, %s1960_s8 }
  0x3a   : > { %v1463_v9 = vpack.c.bf16 %v596_v7, %v595_v6  ;;  %v597_v10 = vld [vmem:[%s567_s30 + $0x10] sm:$0xff]  ;;  %v598_v11 = vld [vmem:[%s567_s30 + $0x18] sm:$0xff]  ;;  %v1472_v12 = vpack.c.bf16 %v685_v8, %v684_v4  ;;  %v681_v14 = vld [vmem:[%s558_s20] sm:$0xff]  ;;  %s583_s17 = scalar_lea.vmem %s2133_s7, %s1950_s19  ;;  %s562_s29 = scalar_lea.vmem %s2177_s2, %s1960_s8 }
  0x3b   : > { %1470 = vmatpush3.bf16.msra.mxu1 %v1469_v5  ;;  %v1466_v13 = vpack.c.bf16 %v598_v11, %v597_v10  ;;  %v594_v15 = vld [vmem:[%s554_s15] sm:$0xff]  ;;  %v768_v26 = vld [vmem:[%s583_s17 + $0x8] sm:$0xff]  ;;  %v769_v27 = vld [vmem:[%s583_s17 + $0x10] sm:$0xff]  ;;  %s1389_s30 = sshll.u32 %s1946_s24, 4  ;;  %s2179_s20 = sld [smem:[#allocation21_spill]] }
  0x3c   : > { %1464 = vmatpush3.bf16.msra.mxu0 %v1463_v9  ;;  %1471 = vmatprep.subr.bf16.mxu1 %v1742_v0  ;;  %v1366_v17 = vld [vmem:[%s570_s18] ss:$0 sm:$0xff]  ;;  %v770_v29 = vld [vmem:[%s583_s17 + $0x18] sm:$0xff]  ;;  %s2178_s18 = sld [smem:[#allocation20_spill]]  ;;  %s2149_s8 = sand.u32 1, %s1716_s25  }
  0x3d   : > { %1465 = vmatprep.subr.bf16.mxu0 %v1742_v0  ;;  %v767_v25 = vld [vmem:[%s583_s17] sm:$0xff]  ;;  %v1478_v30 = vpack.c.bf16 %v770_v29, %v769_v27  ;;  %s1353_s19 = sshll.u32 %s2149_s8, 3  ;;  %s2180_s17 = sld [smem:[#allocation22_spill]] (!%p1376_p5) }
  0x3e   : > { %v1475_v28 = vpack.c.bf16 %v768_v26, %v767_v25  ;;  %v766_v31 = vld [vmem:[%s562_s29] sm:$0xff] }
  0x3f   : > { %1473 = vmatpush3.bf16.msra.mxu1 %v1472_v12 }
  0x40   : > { %1467 = vmatpush3.bf16.msra.mxu0 %v1466_v13  ;;  %1445 = vmatprep.subr.mxu1 %v1744_v1 }
  0x41   : > { %1474 = vmatprep.subr.bf16.mxu0 %v1742_v0  ;;  %s591_s29 = scalar_lea.vmem %s2179_s20, %s1389_s30 }
  0x42   : > { %1432 = vmatmul.mubr.msk.f32.vlgmr.msra.gmra.mrb[0].mxu1 %vm606_vm1, %v681_v14  ;;  %s586_s15 = scalar_lea.vmem %s2178_s18, %s1946_s24  ;;  %v1014_v44 = vld [vmem:[%s591_s29] sm:$0xff]  ;;  %v1015_v45 = vld [vmem:[%s591_s29 + $0x8] sm:$0xff]  ;;  %s543_s18 = scalar_lea.vmem [#allocation2], %s1353_s19 }
  0x43   : > { %1421 = vmatmul.mubr.msk.f32.vlgmr.msra.gmra.mrb[0].mxu0 %vm606_vm1, %v594_v15  ;;  %1447 = vmatprep.mubr.msk.f32.mxu1 %vm1743_vm0, %v1744_v1  ;;  %v1370_v41 = vld [vmem:[%s586_s15] ss:$0 sm:$0xff]  ;;  %v1481_v46 = vpack.c.bf16 %v1015_v45, %v1014_v44  ;;  %s2023_s24 = scalar_lea.vmem [#allocation4], %s1937_s11 }
  0x44   : > { %1442 = vmatprep.mubr.msk.f32.mxu0 %vm1743_vm0, %v1744_v1  ;;  %1476 = vmatpush3.bf16.msra.mxu0 %v1475_v28  ;;  %v1377_v54 = vld [vmem:[%s2180_s17] ss:$0 sm:$0xff] (!%p1376_p5) }
  0x45   : > { %1477 = vmatprep.subr.bf16.mxu0 %v1742_v0 }
  0x48   : > { %1479 = vmatpush3.bf16.msra.mxu0 %v1478_v30 }
  0x49   : > { %1480 = vmatprep.subr.bf16.mxu0 %v1742_v0 }
  0x4b   : > { %1443 = vmatmul.mubr.msk.f32.vlgmr.msra.gmra.mrb[2].mxu0 %vm606_vm1, %v766_v31 }
  0x4c   : > { %1459 = vmatprep.mubr.msk.f32.mxu0 %vm1743_vm0, %v1744_v1  ;;  %1482 = vmatpush3.bf16.msra.mxu0 %v1481_v46 }
 0x115   : > { %v762_v18 = vpop.f32.mrb[0].mxu1 }
 0x116   : > { %v763_v19 = vadd.f32 %v1368_v16, %v762_v18  ;;  %v676_v20 = vpop.f32.mrb[0].mxu0  ;;  %v1433_v21 = vpop.f32.mrb[1].mxu1 }
 0x117   : > { %v677_v22 = vadd.f32 %v1366_v17, %v676_v20  ;;  %v1422_v23 = vpop.f32.mrb[1].mxu0 }
 0x118   : > { %1446 = vmatpush3.xpose.msk.msra.mxu1 %vm851_vm2, %v763_v19 }
 0x119   : > { %v680_v24 = vmul.f32 2.5e+13, %v677_v22  ;;  %1450 = vmatprep.subr.mxu1 %v1744_v1 }
 0x11b   : > { %1448 = vmatmul.mubr.msk.f32.vlgmr.msra.gmra.mrb[2].mxu1 %vm851_vm2, %v680_v24 }
 0x11c   : > { %1452 = vmatprep.mubr.msk.f32.mxu1 %vm1743_vm0, %v1744_v1 }
 0x11e   : > { %v847_v40 = vpop.f32.mrb[2].mxu0 }
 0x11f   : > { %v1444_v42 = vpop.f32.mrb[3].mxu0  ;;  %v848_v43 = vadd.f32 %v1370_v41, %v847_v40 }
 0x121   : > { %1451 = vmatpush3.msra.mxu1 %v848_v43 }
 0x1ee   : > { %v924_v32 = vpop.f32.mrb[2].mxu1 }
 0x1ef   : > { %v1449_v33 = vpop.f32.mrb[3].mxu1  ;;  %v929_v34 = vsel %vm928_vm3, %v924_v32, -inf }
 0x1f0   : > { %930 = vmax.xlane.f32.xlu0 %v929_v34 }
 0x27d   : > { %v931_v35 = vpop.xlane.xlu0 %930 }
 0x27e   : > { %v932_v36 = vsub.f32 %v924_v32, %v931_v35 }
 0x280   : > { %v933_v37 = vmul.f32 1.442695, %v932_v36 }
 0x282   : > { %1586 = vpow2.f32 %v933_v37 }
 0x28c   : > { %v1587_v38 = vpop.eup %1586 }
 0x28d   : > { %v935_v39 = vsel %vm928_vm3, %v1587_v38, 0.0 }
 0x28e   : > { %936 = vadd.xlane.f32.xlu0 %v935_v39 }
 0x31b   : > { %v937_v47 = vpop.xlane.xlu0 %936 }
 0x31c   : > { %1588 = vrcp.f32 %v937_v47 }
 0x326   : > { %v1589_v48 = vpop.eup %1588 }
 0x327   : > { %v939_v49 = vmul.f32 %v1589_v48, %v1587_v38 }
 0x329   : > { %940 = vst.msk [vmem:[%s543_s18] sm:$0xff] %vm928_vm3, %v939_v49  ;;  %1453 = vmatmul.mubr.msk.f32.vlgmr.msra.gmra.mrb[4].mxu1 %vm928_vm3, %v939_v49 }
 0x3fc   : > { %v1010_v50 = vpop.f32.mrb[4].mxu1 }
 0x3fd   : > { %v1454_v51 = vpop.f32.mrb[5].mxu1  ;;  %1460 = vmatmul.mubr.msk.f32.vlgmr.msra.gmra.mrb[4].mxu0 %vm851_vm2, %v1010_v50 }
 0x4cb   : > { %1092 = sbr.rel (%p1376_p5) target bundleno = 1236 (0x4d4), region = 68 }
 0x4d0   : > { %v1085_v52 = vpop.f32.mrb[4].mxu0 }
 0x4d1   : > { %v1461_v53 = vpop.f32.mrb[5].mxu0  ;;  %v1100_v55 = vadd.f32 (!%p1376_p5), %v1377_v54, %v1085_v52 }
 0x4d3   : > { %1101 = vst.msk [vmem:[%s2023_s24] sm:$0xff] %vm606_vm1, %v1100_v55 }
 0x4d4 PF: > { %p1378_p8 = scmp.eq.s32.totalorder %s1724_s27, 0 }
 0x4d6   : > { %1105 = sbr.rel (%p1378_p8) target bundleno = 1246 (0x4de), region = 72 }
 0x4da   : > { %v1106_v56 = vld [vmem:[%s2023_s24] sm:$0xff] (!%p1378_p8) }
 0x4db   : > { %v1107_v57 = vadd.f32 (!%p1378_p8), %v1106_v56, %v1085_v52 }
 0x4dd   : > { %1108 = vst.msk [vmem:[%s2023_s24] sm:$0xff] %vm606_vm1, %v1107_v57 }
 0x4de PF: > { %s1381_s10 = sshll.u32 %s1724_s27, 1  ;;  %s1130_s29 = sshll.u32 %s543_s18, 4  ;;  %s2037_s29 = int_to_ptr.vmem [resolvable:$true] %s1130_s29 }
 0x4df   : > { %s1123_s20 = sadd.s32 %s1728_s28, %s1381_s10  ;;  %s2182_s17 = sld [smem:[#allocation23_spill]] }
 0x4e0   : > { %s1382_s19 = sshll.u32 %s1123_s20, 7  ;;  %s2183_s0 = sand.u32 1, %s1716_s25  }
 0x4e1   : > { %s1110_s1 = scalar_lea.sflag [#allocation3], %s2183_s0  ;;  %s1590_s2 = scalar_lea.vmem %s2037_s29, 128 }
 0x4e2   : > { %p1591_p9 = scmp.ne.s32.totalorder %s2037_s29, %s1590_s2  ;;  %s1745_s27 = smov [#allocation2]  }
 0x4e3   : > { %s1594_s10 = sshll.u32 %s1745_s27, 4  ;;  %s1595_s10 = int_to_ptr.vmem [resolvable:$false] %s1594_s10 }
 0x4e4   : > { %p1592_p10 = pnand %p1591_p9, %p1894_p6  ;;  %s1596_s18 = scalar_lea.vmem %s1595_s10, 256 }
 0x4e5   : > { %s1128_s8 = scalar_lea.hbm %s2182_s17, %s1382_s19  ;;  %p1597_p12 = scmp.lt.s32.totalorder %s2037_s29, %s1595_s10 }
 0x4e6   : > { %p1593_p11 = pneg %p1592_p10  ;;  %p1598_p13 = scmp.lt.s32.totalorder %s1596_s18, %s1590_s2 }
 0x4e8   : > { %p1599_p2 = por %p1598_p13, %p1597_p12 }
 0x4ea   : > { %p1600_p4 = pnand %p1599_p2, %p1593_p11 }
 0x4ec   : > { %1603 = shalt.err (!%p1600_p4)
}
 0x4ed   : > { %s1604_s20 = scalar_lea.hbm %s1128_s8, 128  ;;  %s1608_s15 = scalar_lea.hbm %s2182_s17, 512 }
 0x4ee   : > { %p1605_p3 = scmp.ne.s32.totalorder %s1128_s8, %s1604_s20  ;;  %p1609_p9 = scmp.lt.u32.totalorder %s1128_s8, %s2182_s17 }
 0x4ef   : > { %p1610_p10 = scmp.lt.u32.totalorder %s1608_s15, %s1604_s20  ;;  %p1612_p7 = scmp.lt.u32.totalorder %s1604_s20, %s1128_s8 }
 0x4f0   : > { %p1606_p5 = pnand %p1605_p3, %p1894_p6 }
 0x4f1   : > { %p1611_p1 = por %p1610_p10, %p1609_p9 }
 0x4f2   : > { %p1607_p8 = pneg %p1606_p5 }
 0x4f3   : > { %p1613_p12 = por %p1612_p7, %p1611_p1 }
 0x4f5   : > { %p1614_p11 = pnand %p1613_p12, %p1607_p8 }
 0x4f7   : > { %1617 = shalt.err (!%p1614_p11)
}
 0x4f8   : > { %1483 = dma.vmem_to_hbm [thread:$0]  (%p1894_p6), %s2037_s29, 128, %s1128_s8, %s1110_s1  }
 0x4f9   : > { %s1383_s2 = sshll.u32 %s1728_s28, 7  ;;  %s1143_s27 = sshll.u32 %s2023_s24, 4  ;;  %s1144_s27 = int_to_ptr.vmem [resolvable:$true] %s1143_s27 }
 0x4fa   : > { %s2184_s3 = sld [smem:[#allocation24_spill]]  ;;  %s2185_s20 = sand.u32 1, %s1704_s22  }
 0x4fb   : > { %s1115_s19 = scalar_lea.sflag [#allocation5], %s2185_s20  ;;  %s1618_s15 = scalar_lea.vmem %s1144_s27, 128 }
 0x4fc   : > { %p1619_p7 = scmp.ne.s32.totalorder %s1144_s27, %s1618_s15  ;;  %s1746_s11 = smov [#allocation4]  }
 0x4fd   : > { %s1622_s30 = sshll.u32 %s1746_s11, 4  ;;  %s1623_s30 = int_to_ptr.vmem [resolvable:$false] %s1622_s30 }
 0x4fe   : > { %p1620_p1 = pnand %p1619_p7, %p1922_p0  ;;  %s1624_s4 = scalar_lea.vmem %s1623_s30, 256 }
 0x4ff   : > { %p1625_p6 = scmp.lt.s32.totalorder %s1144_s27, %s1623_s30  ;;  %p1626_p2 = scmp.lt.s32.totalorder %s1624_s4, %s1618_s15 }
 0x500   : > { %s2065_s0 = scalar_lea.hbm %s2184_s3, %s1383_s2  ;;  %p1621_p13 = pneg %p1620_p1 }
 0x501   : > { %p1627_p4 = por %p1626_p2, %p1625_p6 }
 0x503   : > { %p1628_p3 = pnand %p1627_p4, %p1621_p13 }
 0x505   : > { %1631 = shalt.err (!%p1628_p3)
}
 0x506   : > { %s1632_s1 = scalar_lea.hbm %s2065_s0, 128  ;;  %s1636_s24 = scalar_lea.hbm %s2184_s3, 256 }
 0x507   : > { %p1633_p5 = scmp.ne.s32.totalorder %s2065_s0, %s1632_s1  ;;  %p1637_p10 = scmp.lt.u32.totalorder %s2065_s0, %s2184_s3 }
 0x508   : > { %p1638_p12 = scmp.lt.u32.totalorder %s1636_s24, %s1632_s1  ;;  %p1640_p7 = scmp.lt.u32.totalorder %s1632_s1, %s2065_s0 }
 0x509   : > { %p1634_p8 = pnand %p1633_p5, %p1922_p0 }
 0x50a   : > { %p1639_p11 = por %p1638_p12, %p1637_p10 }
 0x50b   : > { %p1635_p9 = pneg %p1634_p8 }
 0x50c   : > { %p1641_p1 = por %p1640_p7, %p1639_p11 }
 0x50e   : > { %p1642_p13 = pnand %p1641_p1, %p1635_p9 }
 0x510   : > { %1645 = shalt.err (!%p1642_p13)
}
 0x511   : > { %1484 = dma.vmem_to_hbm [thread:$0]  (%p1922_p0), %s1144_s27, 128, %s2065_s0, %s1115_s19  }
 0x512 PF: > { %s2186_s4 = sld [smem:[#allocation8_spill]]  ;;  %p1494_p6 = scmp.ge.s32.totalorder %s1740_s13, 2 }
 0x513   : > { %p2187_p2 = scmp.ne.s32.totalorder %s2169_s16, 0 }
 0x515   : > { %p1488_p4 = pnand %p1494_p6, %p2187_p2 }
 0x518   : > { %s1155_s10 = sand.u32 1, %s2186_s4  }
 0x519   : > { %s1156_s18 = scalar_lea.sflag [#allocation3], %s1155_s10 }
 0x51a   : > { %1691 = dma.done.wait (!%p1488_p4), %s1156_s18, 128  }
 0x51b   : > { %1693 = vsyncadd (!%p1488_p4), %s1156_s18, 4294967168  ;;  %s1164_s20 = sand.u32 1, %s1700_s21   ;;  %p2188_p3 = scmp.ne.s32.totalorder %s2172_s12, 0 }
 0x51c   : > { %s1165_s15 = scalar_lea.sflag [#allocation5], %s1164_s20 }
 0x51d   : > { %p1491_p5 = pnand %p1494_p6, %p2188_p3 }
 0x51f   : > { %1695 = dma.done.wait (!%p1491_p5), %s1165_s15, 128  }
 0x520   : > { %1697 = vsyncadd (!%p1491_p5), %s1165_s15, 4294967168  ;;  %s29_s13 = sadd.s32 1, %s1740_s13   ;;  %s2189_s16 = sld [smem:[#allocation14_spill]] }
 0x521   : > { %p26_p0 = scmp.ge.s32.totalorder %s29_s13, 6   ;;  %s2190_s27 = sld [smem:[#allocation9_spill]] }
 0x522   : > { %s2191_s28 = sld [smem:[#allocation10_spill]]  ;;  %s2192_s29 = sld [smem:[#allocation11_spill]] }
 0x523   : > { %s2193_s30 = sld [smem:[#allocation12_spill]]  ;;  %s2194_s21 = smov %s1704_s22 }
 0x524   : > { %s2195_s22 = smov %s1708_s23  ;;  %s2196_s23 = smov %s1909_s9 }
 0x525   : > { %s2197_s24 = smov %s1716_s25  ;;  %s2198_s25 = smov %s1720_s26 }
 0x526   : > { %s2199_s26 = smov %s2189_s16  ;;  %28 = sbr.rel (!%p26_p0) target bundleno = 20 (0x14), region = 151 }
 0x52d   :  { %1170 = vsyncpa [#allocation3], 1 }
 0x52e   :  { %1172 = vsyncpa [#allocation3 + $0x1], 1 }
 0x52f   :  { %1173 = vsyncpa [#allocation5], 1 }
 0x530   :  { %1175 = vsyncpa [#allocation5 + $0x1], 1 }

</bundles_post_ra>
